<compile_context>
chip_gen: v5e
topology: v5e:2x2
jax: 0.10.0
libtpu: 0.0.40
codegen_flags: <defaults>
</compile_context>

<pallas_src>
import functools
import math

import numpy as np
import jax
import jax.numpy as jnp
from jax.experimental import pallas as pl
from jax.experimental.pallas import tpu as pltpu


def build_position_encoding_table(d_model: int, max_seq_len: int) -> np.ndarray:
    """Verbatim port of the PyTorch __init__ table construction (float64 math)."""
    position_encoding = np.array(
        [[pos / np.power(10000, 2.0 * (j // 2) / d_model) for j in range(d_model)]
         for pos in range(max_seq_len)])
    position_encoding[:, 0::2] = np.sin(position_encoding[:, 0::2])
    position_encoding[:, 1::2] = np.cos(position_encoding[:, 1::2])
    pad_row = np.zeros((1, d_model))
    table = np.concatenate([pad_row, position_encoding], axis=0)  # [max_seq_len+1, D]
    return table.astype(np.float32)  # kernel runs in f32 (JAX x64 off by default)


def _round_up(x: int, m: int) -> int:
    return ((x + m - 1) // m) * m


def _choose_tiling(batch: int, max_len: int, d_model: int, target_bytes: int):
    """Pick (TB, B_pad, TL, L_pad, CF, F_pad) so one output block is ~<= target_bytes."""
    row_bytes = d_model * 4
    # Rows per flat chunk such that an 8-row batch block stays within budget.
    tl_budget = max(1, target_bytes // (8 * row_bytes))
    if max_len <= tl_budget:
        tl = max_len                                   # exact: no sequence padding / trim
    else:
        # Keep the chunk width a multiple of 128 lanes (required when CF < F_pad).
        align = 128 // math.gcd(d_model, 128)
        tl = max(align, (tl_budget // align) * align)
    l_pad = _round_up(max_len, tl)
    cf = tl * d_model
    f_pad = l_pad * d_model

    tb_budget = max(8, min(512, ((target_bytes // (cf * 4)) // 8) * 8))
    if batch <= tb_budget:
        tb, b_pad = batch, batch                       # single batch block, no padding
    else:
        tb = tb_budget                                 # multiple of 8 by construction
        b_pad = _round_up(batch, tb)
    return tb, b_pad, tl, l_pad, cf, f_pad


def _pe_kernel(lens_ref, table_ref, out_ref, *, d_model: int, batch_blocks: int):
    """One grid step writes one (TB, CF) tile of the flattened output.

    lens_ref  : VMEM int32   [B_pad, 1]  resident sequence lengths (0 for pad rows)
    table_ref : VMEM float32 [1, CF]     chunk j of flattened table rows 1..L_pad
    out_ref   : VMEM float32 [TB, CF]    output tile (batch block i, flat chunk j)
    """
    tb, cf = out_ref.shape
    j = pl.program_id(0)          # flat (seq*d_model) chunk index
    i = pl.program_id(1)          # batch block index
    if batch_blocks == 1:
        lens = lens_ref[...]                              # (TB, 1)
    else:
        start = pl.multiple_of(i * tb, tb)                # TB is a multiple of 8 here
        lens = lens_ref[pl.ds(start, tb), :]              # (TB, 1)
    # Global flat column c holds table[1 + c // D, c % D]; valid iff c < len*D.
    col = j * cf + jax.lax.broadcasted_iota(jnp.int32, (tb, cf), 1)
    mask = col < lens * d_model                           # (TB,1) -> (TB,CF) broadcast
    # Pad value 0 == table row 0 (asserted all-zero at construction).
    out_ref[...] = jnp.where(mask, table_ref[...], jnp.zeros((), out_ref.dtype))


class PositionalEncoding:
    """Pallas/TPU equivalent of the PyTorch PositionalEncoding module."""

    def __init__(self, d_model: int, max_seq_len: int):
        self.d_model = int(d_model)
        self.max_seq_len = int(max_seq_len)
        self.table_np = build_position_encoding_table(self.d_model, self.max_seq_len)
        # The in-kernel pad value (scalar 0) is only correct because row 0 of the
        # table is the explicit all-zero pad row — assert it once here.
        assert np.all(self.table_np[0] == 0.0), "pad row of the PE table must be zero"
        self._slab_cache = {}  # l_pad -> (1, l_pad*d_model) float32 device array

    def _table_slab(self, l_pad: int):
        slab = self._slab_cache.get(l_pad)
        if slab is None:
            usable = min(l_pad, self.max_seq_len)
            rows = self.table_np[1:1 + usable]
            if usable < l_pad:
                rows = np.concatenate(
                    [rows, np.zeros((l_pad - usable, self.d_model), np.float32)], axis=0)
            slab = jnp.asarray(rows.reshape(1, l_pad * self.d_model))
            self._slab_cache[l_pad] = slab
        return slab

    def __call__(self, input_len, max_len=None, *,
                 target_block_bytes: int = 2 * 1024 * 1024, trim: bool = True):
        input_len = jnp.asarray(input_len, dtype=jnp.int32)
        (batch,) = input_len.shape

        if max_len is None:
            # Data-dependent output shape, as in torch.max(input_len).
            # TODO(synk): this device->host sync (plus per-max_len recompile) can
            # dominate the kernel at small shapes; callers should pass a static
            # max_len (e.g. max_seq_len or a fixed bucket) when feasible.
            max_len = int(jax.device_get(jnp.max(input_len)))
        max_len = int(max_len)
        if max_len < 1:
            raise ValueError("max_len must be >= 1")
        if max_len > self.max_seq_len:
            raise ValueError(
                f"max(input_len)={max_len} exceeds max_seq_len={self.max_seq_len} "
                "(the PyTorch module would index the embedding out of range)")

        d = self.d_model
        tb, b_pad, _tl, l_pad, cf, f_pad = _choose_tiling(
            batch, max_len, d, target_block_bytes)
        nf = f_pad // cf
        nb = b_pad // tb

        table_slab = self._table_slab(l_pad)

        if b_pad == batch:
            lens2d = input_len.reshape(batch, 1)
        else:
            lens2d = jnp.zeros((b_pad, 1), jnp.int32).at[:batch, 0].set(input_len)

        kernel = functools.partial(_pe_kernel, d_model=d, batch_blocks=nb)

        out_flat = pl.pallas_call(
            kernel,
            out_shape=jax.ShapeDtypeStruct((b_pad, f_pad), jnp.float32),
            grid=(nf, nb),  # flat-chunk outer: each table chunk DMA'd once, revisited
            in_specs=[
                # Lengths: whole array resident in VMEM, DMA'd once (index constant).
                pl.BlockSpec((b_pad, 1), lambda j, i: (0, 0)),
                # Table chunk for this slice of the flattened (seq*d_model) axis.
                pl.BlockSpec((1, cf), lambda j, i: (0, j)),
            ],
            out_specs=pl.BlockSpec((tb, cf), lambda j, i: (i, j)),
            compiler_params=pltpu.CompilerParams(
                dimension_semantics=("parallel", "parallel"),
            ),
        )(lens2d, table_slab)

        out = out_flat.reshape(b_pad, l_pad, d)
        if trim and (b_pad != batch or l_pad != max_len):
            # Only reached in the padded (large-seq / large-batch) regime; pass
            # trim=False and slice in the consumer to avoid the extra copy.
            out = out[:batch, :max_len, :]
        return out


if __name__ == "__main__":
    d_model = 32
    max_seq_len = 16

    pe = PositionalEncoding(d_model, max_seq_len)
    table_np = pe.table_np  # [max_seq_len + 1, d_model]

    def reference(lens_np, max_len):
        b = lens_np.shape[0]
        ref = np.zeros((b, max_len, d_model), dtype=np.float32)
        for bi, lb in enumerate(lens_np.tolist()):
            pos = list(range(1, lb + 1)) + [0] * (max_len - lb)
            ref[bi] = table_np[np.asarray(pos, dtype=np.int64)]
        return ref

    key = jax.random.PRNGKey(0)
    k1, k2 = jax.random.split(key)

    # Case 1: small shapes -> single-block fast path (no padding, no slicing).
    batch = 4
    input_len = jax.random.randint(k1, (batch,), 1, max_seq_len + 1).astype(jnp.int32)
    lens_np = np.asarray(jax.device_get(input_len))
    max_len = int(lens_np.max())           # host-resolved, as torch.max(input_len)
    out = pe(input_len, max_len=max_len)
    out = jax.block_until_ready(out)
    np.testing.assert_allclose(np.asarray(out), reference(lens_np, max_len),
                               rtol=1e-6, atol=1e-6)

    # Case 2: force the multi-block path (blocked flat axis, batch blocks,
    # resident-lens dynamic slice, trailing trim) with a tiny block budget.
    batch2 = 24
    input_len2 = jax.random.randint(k2, (batch2,), 1, max_seq_len + 1).astype(jnp.int32)
    lens2_np = np.asarray(jax.device_get(input_len2))
    max_len2 = int(lens2_np.max())
    out2 = pe(input_len2, max_len=max_len2, target_block_bytes=4096)
    out2 = jax.block_until_ready(out2)
    np.testing.assert_allclose(np.asarray(out2), reference(lens2_np, max_len2),
                               rtol=1e-6, atol=1e-6)

    print("KERNEL_OK")
</pallas_src>

<mosaic_0001>
module attributes {stable_mosaic.version = 11 : i64} {
  func.func @_pe_kernel(%arg0: i32, %arg1: i32, %arg2: memref<4x1xi32, #tpu.memory_space<vmem>>, %arg3: memref<1x512xf32, #tpu.memory_space<vmem>>, %arg4: memref<4x512xf32, #tpu.memory_space<vmem>>) attributes {dimension_semantics = [#tpu.dimension_semantics<parallel>, #tpu.dimension_semantics<parallel>], iteration_bounds = array<i64: 1, 1>, scalar_prefetch = 0 : i64, scratch_operands = 0 : i64, tpu.core_type = #tpu.core_type<tc>, window_params = [{pipeline_mode = #tpu.pipeline_mode<synchronous>, transform_indices = @transform_0, window_bounds = array<i64: 4, 1>}, {transform_indices = @transform_1, window_bounds = array<i64: 1, 512>}, {transform_indices = @transform_2, window_bounds = array<i64: 4, 512>}]} {
    %c0 = arith.constant 0 : index
    %c0_0 = arith.constant 0 : index
    %0 = vector.load %arg2[%c0, %c0_0] : memref<4x1xi32, #tpu.memory_space<vmem>>, vector<4x1xi32>
    %c512_i32 = arith.constant 512 : i32
    %1 = arith.muli %arg0, %c512_i32 : i32
    %2 = tpu.iota {dimensions = array<i32: 1>} : vector<4x512xi32>
    %3 = vector.broadcast %1 : i32 to vector<4x512xi32>
    %4 = arith.addi %3, %2 : vector<4x512xi32>
    %c32_i32 = arith.constant 32 : i32
    %5 = vector.broadcast %c32_i32 : i32 to vector<4x1xi32>
    %6 = arith.muli %0, %5 : vector<4x1xi32>
    %7 = vector.broadcast %6 : vector<4x1xi32> to vector<4x512xi32>
    %8 = arith.cmpi slt, %4, %7 : vector<4x512xi32>
    %c0_1 = arith.constant 0 : index
    %c0_2 = arith.constant 0 : index
    %9 = vector.load %arg3[%c0_1, %c0_2] : memref<1x512xf32, #tpu.memory_space<vmem>>, vector<1x512xf32>
    %cst = arith.constant 0.000000e+00 : f32
    %10 = vector.shape_cast %9 : vector<1x512xf32> to vector<1x512xf32>
    %11 = vector.broadcast %10 : vector<1x512xf32> to vector<4x512xf32>
    %12 = vector.broadcast %cst : f32 to vector<4x512xf32>
    %13 = arith.select %8, %11, %12 : vector<4x512xi1>, vector<4x512xf32>
    %c0_3 = arith.constant 0 : index
    %c0_4 = arith.constant 0 : index
    %14 = vector.load %arg4[%c0_3, %c0_4] : memref<4x512xf32, #tpu.memory_space<vmem>>, vector<4x512xf32>
    tpu.vector_store %arg4[%c0_3, %c0_4], %13 {strides = array<i32>} : memref<4x512xf32, #tpu.memory_space<vmem>>, vector<4x512xf32>,
    return
  }
  func.func @transform_0(%arg0: i32, %arg1: i32) -> (i32, i32) {
    %c0_i32 = arith.constant 0 : i32
    %c0_i32_0 = arith.constant 0 : i32
    %c0_i32_1 = arith.constant 0 : i32
    return %c0_i32, %c0_i32_0 : i32, i32
  }
  func.func @transform_1(%arg0: i32, %arg1: i32) -> (i32, i32) {
    %c0_i32 = arith.constant 0 : i32
    %c0_i32_0 = arith.constant 0 : i32
    return %c0_i32, %arg0 : i32, i32
  }
  func.func @transform_2(%arg0: i32, %arg1: i32) -> (i32, i32) {
    %c0_i32 = arith.constant 0 : i32
    return %arg1, %arg0 : i32, i32
  }
}

</mosaic_0001>

<bundles_post_ra>
// kernel: tpu_custom_call.1
= control target key start
LH: loop header
LB: loop body
LE: loop exit
PB: predicated region body
PF: predicated region fallthrough
CT: control target
= control target key end

     0   :  { %v104_v1 = vmov 0   ;;  %s130_s0 = inlined_call_operand.vmem [shape: s32[4,1], index: 0, kind: input, shape index: {}]   ;;  %s131_s1 = inlined_call_operand.vmem [shape: f32[1,512], index: 1, kind: input, shape index: {}]   ;;  %s132_s2 = inlined_call_operand.hbm [shape: f32[4,512], index: 2, kind: output, shape index: {}]  }
   0x1   :  { %v12_v0 = vld [vmem:[%s130_s0] sm:$0xf]  ;;  %77 = vset.pattern.permute.xlu0 %v104_v1 }
   0x2   :  { %v24_v2 = vmul.u32 32, %v12_v0 }
   0x3   :  { %7 = vsyncpa [#allocation3], 0  ;;  %v14_v3 = vlaneseq  ;;  %v32_v5 = vld [vmem:[%s131_s1] sm:$0xf]  ;;  %vm52_vm4 = vcmask 1043456   ;;  %s105_s0 = smov [#allocation2]  }
   0x4   :  { %26 = vperm.xlu0 %77, %v24_v2   ;;  %v35_v9 = vperm.slane %v32_v5, 1  ;;  %v37_v10 = vperm.slane %v32_v5, 3  ;;  %v34_v11 = vperm.slane %v32_v5, 0  ;;  %v36_v12 = vperm.slane %v32_v5, 2  ;;  %s64_s13 = sshll.u32 %s105_s0, 4  ;;  %s66_s1 = sshll.u32 %s132_s2, 4  ;;  %s65_s13 = int_to_ptr.vmem [resolvable:$true] %s64_s13  ;;  %s67_s1 = int_to_ptr.hbm [resolvable:$true] %s66_s1 }
   0x5   :  { %v15_v4 = vand.u32 127, %v14_v3 }
   0x7   :  { %v16_v6 = vadd.s32 128, %v15_v4  ;;  %v17_v7 = vadd.s32 256, %v15_v4  ;;  %v18_v8 = vadd.s32 384, %v15_v4 }
  0x76   :  { %v27_v13 = vpop.permute.xlu0 %26 }
  0x77   :  { %vm28_vm0 = vcmp.lt.s32.totalorder %v15_v4, %v27_v13  ;;  %vm29_vm1 = vcmp.lt.s32.totalorder %v16_v6, %v27_v13  ;;  %vm30_vm2 = vcmp.lt.s32.totalorder %v17_v7, %v27_v13  ;;  %vm31_vm3 = vcmp.lt.s32.totalorder %v18_v8, %v27_v13 }
  0x78   :  { %v43_v14 = vsel %vm29_vm1, %v35_v9, 0.0  ;;  %v45_v15 = vsel %vm31_vm3, %v37_v10, 0.0  ;;  %v42_v18 = vsel %vm28_vm0, %v34_v11, 0.0  ;;  %v44_v19 = vsel %vm30_vm2, %v36_v12, 0.0 }
  0x79   :  { %v50_v16 = vrot.slane %v43_v14, 4  ;;  %v51_v17 = vrot.slane %v45_v15, 4 }
  0x7b   :  { %v53_v20 = vsel %vm52_vm4, %v42_v18, %v50_v16  ;;  %v54_v21 = vsel %vm52_vm4, %v44_v19, %v51_v17 }
  0x7c   :  { %57 = vst [vmem:[#allocation2] sm:$0xff] %v53_v20 }
  0x7d   :  { %58 = vst [vmem:[#allocation2 + $0x8] sm:$0xff] %v54_v21 }
  0x7e   :  { %69 = dma.vmem_to_hbm [thread:$0]  %s65_s13, 256, %s67_s1, [#allocation3]  }
  0x7f   :  { %102 = dma.done.wait [#allocation3], 256  }
  0x80   :  { %103 = vsyncadd [#allocation3], 4294967040 }
  0x81   :  { %74 = vsyncpa [#allocation3], 1 }

</bundles_post_ra>
